<compile_context>
chip_gen: v6e
topology: v6e:2x2x1
jax: 0.10.0
libtpu: 0.0.40
codegen_flags: <defaults>
</compile_context>

<pallas_src>
import functools

import jax
import jax.numpy as jnp
from jax.experimental import pallas as pl
from jax.experimental.pallas import tpu as pltpu


def _round_up(x, m):
    return ((x + m - 1) // m) * m


def _centroid_kernel(labels_ref, h_ref, out_ref, cnt_ref, *, k_pad):
    """Accumulate per-cluster sums/counts over the token (N) grid axis.

    Grid: (d_splits, N_tiles) with the reduction axis (N) last.
      labels_ref : (1, tn)       int32   cluster label per token (-1 = padding)
      h_ref      : (tn, td)      float32 hidden-state tile
      out_ref    : (k_pad, td)   float32 concepts tile; doubles as the sum
                                          accumulator (resident across N steps)
      cnt_ref    : (k_pad, 128)  float32 lane-dense per-cluster count scratch
    """
    n = pl.program_id(1)

    @pl.when(n == 0)
    def _():
        out_ref[...] = jnp.zeros_like(out_ref)
        cnt_ref[...] = jnp.zeros_like(cnt_ref)

    labels = labels_ref[...]                                      # (1, tn)
    tn = labels.shape[1]
    k_iota = jax.lax.broadcasted_iota(jnp.int32, (k_pad, tn), 0)
    onehot = (labels == k_iota).astype(jnp.float32)               # (k_pad, tn)

    # Hot path: one-hot selection matmul on the MXU, accumulated straight into
    # the resident output block.
    out_ref[...] += jnp.dot(onehot, h_ref[...],
                            preferred_element_type=jnp.float32)

    # Counts: (k_pad, 1) per-tile sum broadcast over the 128-lane scratch so
    # the store stays unmasked.  Accumulated per D tile (safe under megacore).
    cnt_ref[...] += jnp.sum(onehot, axis=1, keepdims=True)

    @pl.when(n == pl.num_programs(1) - 1)
    def _():
        cnt = jnp.maximum(cnt_ref[:, 0:1], 1.0)                   # (k_pad, 1)
        out_ref[...] = out_ref[...] / cnt


def cluster_means_pallas(hidden_states, labels, n_clusters, *, tn=1024,
                         d_splits=1):
    """concepts[k] = mean over tokens with labels == k of hidden_states.

    hidden_states: (N, D) float32   (bf16 also works if upstream allows it —
                                     halves HBM traffic; accumulation is f32)
    labels:        (N,)   int32
    d_splits:      1 for a single pass over D (v5e/v6e); 2 on v7x to give the
                   megacore a size-2 parallel axis.
    returns:       (n_clusters, D) float32
    """
    n_tok, d = hidden_states.shape
    assert d % d_splits == 0, "D must split evenly across d_splits"
    td = d // d_splits
    assert td % 128 == 0, "per-split hidden width must be lane aligned"

    # Pad the cluster count to a sublane multiple for a predictable layout.
    k_pad = _round_up(max(n_clusters, 8), 8)

    # Token tile: as large as requested, but never larger than (padded) N, and
    # always a sublane multiple.  Pad N up to a tile multiple (tail handling).
    tn = min(tn, _round_up(n_tok, 8))
    tn = _round_up(tn, 8)
    n_pad = _round_up(n_tok, tn)

    hidden_states = hidden_states.astype(jnp.float32)
    labels = labels.astype(jnp.int32)
    if n_pad != n_tok:
        hidden_states = jnp.pad(hidden_states, ((0, n_pad - n_tok), (0, 0)))
        labels = jnp.pad(labels, (0, n_pad - n_tok), constant_values=-1)
    labels2d = labels.reshape(1, n_pad)

    kernel = functools.partial(_centroid_kernel, k_pad=k_pad)

    out = pl.pallas_call(
        kernel,
        out_shape=jax.ShapeDtypeStruct((k_pad, d), jnp.float32),
        grid_spec=pltpu.PrefetchScalarGridSpec(
            num_scalar_prefetch=0,
            grid=(d_splits, n_pad // tn),
            in_specs=[
                pl.BlockSpec((1, tn), lambda di, ni: (0, ni)),    # labels
                pl.BlockSpec((tn, td), lambda di, ni: (ni, di)),  # hidden
            ],
            out_specs=pl.BlockSpec((k_pad, td), lambda di, ni: (0, di)),
            scratch_shapes=[
                pltpu.VMEM((k_pad, 128), jnp.float32),            # counts
            ],
        ),
        compiler_params=pltpu.CompilerParams(
            dimension_semantics=("parallel", "arbitrary"),
        ),
    )(labels2d, hidden_states)

    return out[:n_clusters]


def conceptx_extract_concepts(hidden_chunks, labels, cfg, **kernel_kwargs):
    """JAX/Pallas analogue of ConceptX.extract_concepts.

    hidden_chunks: list of (tokens_i, 512) arrays (stand-in for the activations
                   captured from 'blocks.5.hook_resid_post', already reshaped).
    labels:        (N,) int32 cluster assignment per token.
    """
    # Glue: concatenate and truncate to ConceptX_max_token (mirrors the token
    # cap loop in extract_concepts).
    hidden_states = jnp.concatenate(hidden_chunks, axis=0)
    hidden_states = hidden_states[: cfg["ConceptX_max_token"]]
    labels = labels[: hidden_states.shape[0]]

    # TODO(synk): sklearn AgglomerativeClustering (hierarchical merge loop) has
    # no clean Pallas equivalent; cluster labels are supplied externally here.

    return cluster_means_pallas(
        hidden_states, labels, cfg["ConceptX_clusters"], **kernel_kwargs
    )


def _reference_means(h, labels, n_clusters):
    onehot = (labels[None, :] == jnp.arange(n_clusters)[:, None]).astype(
        jnp.float32
    )
    return (onehot @ h) / jnp.maximum(onehot.sum(axis=1, keepdims=True), 1.0)


if __name__ == "__main__":
    key = jax.random.PRNGKey(0)
    k_h, k_l, k_h2, k_l2 = jax.random.split(key, 4)

    D = 512  # hidden size hard-coded in the module (reshape(-1, 512))

    # --- Test 1: module-sized demo (truncation + non-multiple N, K < 8) ------
    N_RAW, N_MAX, K = 384, 300, 7
    cfg = {"ConceptX_max_token": N_MAX, "ConceptX_clusters": K}

    h_all = jax.random.normal(k_h, (N_RAW, D), dtype=jnp.float32)
    hidden_chunks = [h_all[: N_RAW // 2], h_all[N_RAW // 2 :]]
    labels = jax.random.randint(k_l, (N_RAW,), 0, K, dtype=jnp.int32)

    concepts = conceptx_extract_concepts(hidden_chunks, labels, cfg)
    concepts = jax.block_until_ready(concepts)

    ref = _reference_means(h_all[:N_MAX], labels[:N_MAX], K)
    assert concepts.shape == (K, D)
    assert jnp.allclose(concepts, ref, atol=1e-4, rtol=1e-4)

    # --- Test 2: multi-tile reduction + megacore-style D split (v7x path) ----
    N2, K2 = 1100, 10
    h2 = jax.random.normal(k_h2, (N2, D), dtype=jnp.float32)
    labels2 = jax.random.randint(k_l2, (N2,), 0, K2, dtype=jnp.int32)

    concepts2 = cluster_means_pallas(h2, labels2, K2, tn=256, d_splits=2)
    concepts2 = jax.block_until_ready(concepts2)

    ref2 = _reference_means(h2, labels2, K2)
    assert concepts2.shape == (K2, D)
    assert jnp.allclose(concepts2, ref2, atol=1e-4, rtol=1e-4)

    print("KERNEL_OK")
</pallas_src>

<mosaic_0001>
module attributes {stable_mosaic.version = 11 : i64} {
  func.func @_centroid_kernel(%arg0: i32, %arg1: i32, %arg2: memref<1x304xi32, #tpu.memory_space<vmem>>, %arg3: memref<304x512xf32, #tpu.memory_space<vmem>>, %arg4: memref<8x512xf32, #tpu.memory_space<vmem>>, %arg5: memref<8x128xf32, #tpu.memory_space<vmem>>) attributes {dimension_semantics = [#tpu.dimension_semantics<parallel>, #tpu.dimension_semantics<arbitrary>], iteration_bounds = array<i64: 1, 1>, scalar_prefetch = 0 : i64, scratch_operands = 1 : i64, tpu.core_type = #tpu.core_type<tc>, window_params = [{transform_indices = @transform_0, window_bounds = array<i64: 1, 304>}, {transform_indices = @transform_1, window_bounds = array<i64: 304, 512>}, {transform_indices = @transform_2, window_bounds = array<i64: 8, 512>}]} {
    %c0_i32 = arith.constant 0 : i32
    %0 = arith.cmpi eq, %arg1, %c0_i32 : i32
    %1 = arith.extui %0 : i1 to i32
    %c0_i32_0 = arith.constant 0 : i32
    %2 = arith.cmpi ne, %1, %c0_i32_0 : i32
    scf.if %2 {
      %cst_15 = arith.constant 0.000000e+00 : f32
      %23 = vector.broadcast %cst_15 : f32 to vector<8x512xf32>
      %c0_16 = arith.constant 0 : index
      %c0_17 = arith.constant 0 : index
      %24 = vector.load %arg4[%c0_16, %c0_17] : memref<8x512xf32, #tpu.memory_space<vmem>>, vector<8x512xf32>
      tpu.vector_store %arg4[%c0_16, %c0_17], %23 {strides = array<i32>} : memref<8x512xf32, #tpu.memory_space<vmem>>, vector<8x512xf32>,
      %cst_18 = arith.constant 0.000000e+00 : f32
      %25 = vector.broadcast %cst_18 : f32 to vector<8x128xf32>
      %c0_19 = arith.constant 0 : index
      %c0_20 = arith.constant 0 : index
      %26 = vector.load %arg5[%c0_19, %c0_20] : memref<8x128xf32, #tpu.memory_space<vmem>>, vector<8x128xf32>
      tpu.vector_store %arg5[%c0_19, %c0_20], %25 {strides = array<i32>} : memref<8x128xf32, #tpu.memory_space<vmem>>, vector<8x128xf32>,
    } else {
    }
    %c0 = arith.constant 0 : index
    %c0_1 = arith.constant 0 : index
    %3 = vector.load %arg2[%c0, %c0_1] : memref<1x304xi32, #tpu.memory_space<vmem>>, vector<1x304xi32>
    %4 = tpu.iota {dimensions = array<i32: 0>} : vector<8x304xi32>
    %5 = vector.broadcast %3 : vector<1x304xi32> to vector<8x304xi32>
    %6 = arith.cmpi eq, %5, %4 : vector<8x304xi32>
    %7 = arith.extui %6 : vector<8x304xi1> to vector<8x304xi32>
    %8 = arith.sitofp %7 : vector<8x304xi32> to vector<8x304xf32>
    %c0_2 = arith.constant 0 : index
    %c0_3 = arith.constant 0 : index
    %9 = vector.load %arg4[%c0_2, %c0_3] : memref<8x512xf32, #tpu.memory_space<vmem>>, vector<8x512xf32>
    %c0_4 = arith.constant 0 : index
    %c0_5 = arith.constant 0 : index
    %10 = vector.load %arg3[%c0_4, %c0_5] : memref<304x512xf32, #tpu.memory_space<vmem>>, vector<304x512xf32>
    %cst = arith.constant dense<0.000000e+00> : vector<8x512xf32>
    %11 = tpu.matmul %8, %10, %cst {dimension_numbers = #tpu.dot_dimension_numbers<[1], [0], [0], [1], [0, 0, 1, 1], [], []>} : vector<8x304xf32>, vector<304x512xf32>, vector<8x512xf32> -> vector<8x512xf32>
    %12 = arith.addf %9, %11 : vector<8x512xf32>
    %c0_6 = arith.constant 0 : index
    %c0_7 = arith.constant 0 : index
    %13 = vector.load %arg4[%c0_6, %c0_7] : memref<8x512xf32, #tpu.memory_space<vmem>>, vector<8x512xf32>
    tpu.vector_store %arg4[%c0_6, %c0_7], %12 {strides = array<i32>} : memref<8x512xf32, #tpu.memory_space<vmem>>, vector<8x512xf32>,
    %c0_8 = arith.constant 0 : index
    %c0_9 = arith.constant 0 : index
    %14 = vector.load %arg5[%c0_8, %c0_9] : memref<8x128xf32, #tpu.memory_space<vmem>>, vector<8x128xf32>
    %cst_10 = arith.constant dense<0.000000e+00> : vector<8xf32>
    %15 = vector.multi_reduction <add>, %8, %cst_10 [1] : vector<8x304xf32> to vector<8xf32>
    %16 = vector.shape_cast %15 : vector<8xf32> to vector<8x1xf32>
    %17 = vector.broadcast %16 : vector<8x1xf32> to vector<8x128xf32>
    %18 = arith.addf %14, %17 : vector<8x128xf32>
    %c0_11 = arith.constant 0 : index
    %c0_12 = arith.constant 0 : index
    %19 = vector.load %arg5[%c0_11, %c0_12] : memref<8x128xf32, #tpu.memory_space<vmem>>, vector<8x128xf32>
    tpu.vector_store %arg5[%c0_11, %c0_12], %18 {strides = array<i32>} : memref<8x128xf32, #tpu.memory_space<vmem>>, vector<8x128xf32>,
    %c0_i32_13 = arith.constant 0 : i32
    %20 = arith.cmpi eq, %arg1, %c0_i32_13 : i32
    %21 = arith.extui %20 : i1 to i32
    %c0_i32_14 = arith.constant 0 : i32
    %22 = arith.cmpi ne, %21, %c0_i32_14 : i32
    scf.if %22 {
      %c0_15 = arith.constant 0 : index
      %c0_16 = arith.constant 0 : index
      %23 = vector.load %arg5[%c0_15, %c0_16] : memref<8x128xf32, #tpu.memory_space<vmem>>, vector<8x1xf32>
      %cst_17 = arith.constant 1.000000e+00 : f32
      %24 = vector.broadcast %cst_17 : f32 to vector<8x1xf32>
      %25 = arith.maximumf %23, %24 : vector<8x1xf32>
      %c0_18 = arith.constant 0 : index
      %c0_19 = arith.constant 0 : index
      %26 = vector.load %arg4[%c0_18, %c0_19] : memref<8x512xf32, #tpu.memory_space<vmem>>, vector<8x512xf32>
      %27 = vector.broadcast %25 : vector<8x1xf32> to vector<8x512xf32>
      %28 = arith.divf %26, %27 : vector<8x512xf32>
      %c0_20 = arith.constant 0 : index
      %c0_21 = arith.constant 0 : index
      %29 = vector.load %arg4[%c0_20, %c0_21] : memref<8x512xf32, #tpu.memory_space<vmem>>, vector<8x512xf32>
      tpu.vector_store %arg4[%c0_20, %c0_21], %28 {strides = array<i32>} : memref<8x512xf32, #tpu.memory_space<vmem>>, vector<8x512xf32>,
    } else {
    }
    return
  }
  func.func @transform_0(%arg0: i32, %arg1: i32) -> (i32, i32) {
    %c0_i32 = arith.constant 0 : i32
    %c0_i32_0 = arith.constant 0 : i32
    return %c0_i32, %arg1 : i32, i32
  }
  func.func @transform_1(%arg0: i32, %arg1: i32) -> (i32, i32) {
    %c0_i32 = arith.constant 0 : i32
    return %arg1, %arg0 : i32, i32
  }
  func.func @transform_2(%arg0: i32, %arg1: i32) -> (i32, i32) {
    %c0_i32 = arith.constant 0 : i32
    %c0_i32_0 = arith.constant 0 : i32
    return %c0_i32, %arg0 : i32, i32
  }
}

</mosaic_0001>

<bundles_post_ra>
// kernel: tpu_custom_call.1
= control target key start
LH: loop header
LB: loop body
LE: loop exit
PB: predicated region body
PF: predicated region fallthrough
CT: control target
= control target key end

     0   :  { %7 = vsyncpa [#allocation4], 0  ;;  %s733_s0 = inlined_call_operand.hbm [shape: s32[1,304], index: 0, kind: input, shape index: {}]   ;;  %s734_s1 = inlined_call_operand.hbm [shape: f32[304,512], index: 1, kind: input, shape index: {}]   ;;  %s735_s2 = inlined_call_operand.hbm [shape: f32[8,512], index: 2, kind: output, shape index: {}]  }
   0x1   :  { %8 = vsyncpa [#allocation7], 0 }
   0x2   :  { %9 = vsyncpa [#allocation5], 0  ;;  %s656_s9 = smov [#allocation3]   ;;  %s657_s11 = smov [#allocation6]  }
   0x3   :  { %s16_s10 = sshll.u32 %s656_s9, 4  ;;  %s25_s12 = sshll.u32 %s657_s11, 4  ;;  %s17_s10 = int_to_ptr.vmem [resolvable:$true] %s16_s10  ;;  %s26_s12 = int_to_ptr.vmem [resolvable:$true] %s25_s12 }
   0x4   :  { %s598_s13 = scalar_lea.vmem %s17_s10, 48  ;;  %s602_s14 = scalar_lea.vmem %s17_s10, 64 }
   0x5   :  { %p599_p0 = scmp.ne.s32.totalorder %s17_s10, %s598_s13  ;;  %p603_p1 = scmp.lt.s32.totalorder %s17_s10, %s17_s10 }
   0x6   :  { %p604_p2 = scmp.lt.s32.totalorder %s602_s14, %s598_s13 }
   0x8   :  { %p605_p3 = por %p604_p2, %p603_p1 }
   0xa   :  { %p606_p4 = pnand %p605_p3, %p599_p0 }
   0xc   :  { %609 = shalt.err (!%p606_p4)
}
   0xd   :  { %19 = dma.hbm_to_vmem [thread:$0]  %s733_s0, 48, %s17_s10, [#allocation4]  }
   0xe   :  { %s618_s17 = scalar_lea.vmem %s26_s12, 19456  ;;  %p623_p6 = scmp.lt.s32.totalorder %s26_s12, %s26_s12 }
   0xf   :  { %p619_p5 = scmp.ne.s32.totalorder %s26_s12, %s618_s17  ;;  %p624_p7 = scmp.lt.s32.totalorder %s618_s17, %s618_s17 }
  0x11   :  { %p625_p8 = por %p624_p7, %p623_p6 }
  0x13   :  { %p626_p9 = pnand %p625_p8, %p619_p5 }
  0x15   :  { %629 = shalt.err (!%p626_p9)
}
  0x16   :  { %s658_s18 = smov 512   ;;  %s659_s19 = smov 32  }
  0x17   :  { %31 = dma.hbm_to_vmem [thread:$0]  %s734_s1, 19456, %s26_s12, [#allocation7], %s658_s18, %s658_s18, %s659_s19  }
  0x18   :  { %650 = dma.done.wait [#allocation4], 48  }
  0x19   :  { %651 = vsyncadd [#allocation4], 4294967248 }
  0x1a   :  { %652 = dma.done.wait [#allocation7], 19456  }
  0x1b   :  { %653 = vsyncadd [#allocation7], 4294947840  ;;  %v48_v0 = vlaneseq  ;;  %v660_v1 = vmov 0.0   ;;  %v136_v3 = vld [vmem:[#allocation6 + $0x1e8] sm:$0xff]  ;;  %v135_v4 = vld [vmem:[#allocation6 + $0x1e0] sm:$0xff]  ;;  %vm227_vm0 = vcmask 392192  }
  0x1c   :  { %366 = vmatprep.mubr.f32.mxu1 %v660_v1  ;;  %v224_v5 = vld [vmem:[#allocation6 + $0x4a8] sm:$0xff]  ;;  %231 = vmatprep.subr.mxu0 %v136_v3  ;;  %v223_v7 = vld [vmem:[#allocation6 + $0x4a0] sm:$0xff]  ;;  %v47_v22 = vld [vmem:[#allocation3] sm:$0x7]  ;;  %s663_s0 = smov [#allocation8]  }
  0x1d   :  { %v686_v2 = vshrl.u32 %v48_v0, 7  ;;  %322 = vmatprep.subr.mxu1 %v224_v5  ;;  %v132_v6 = vld [vmem:[#allocation6 + $0x1c8] sm:$0xff]  ;;  %v131_v8 = vld [vmem:[#allocation6 + $0x1c0] sm:$0xff]  ;;  %232 = vmatpush1.msra.mxu0 %v135_v4  ;;  %v138_v40 = vld [vmem:[#allocation6 + $0x1f8] sm:$0xff]  ;;  %s560_s1 = sshll.u32 %s663_s0, 4  ;;  %s561_s1 = int_to_ptr.vmem [resolvable:$true] %s560_s1 }
  0x1e   :  { %323 = vmatpush1.msra.mxu1 %v223_v7  ;;  %v220_v9 = vld [vmem:[#allocation6 + $0x488] sm:$0xff]  ;;  %v219_v11 = vld [vmem:[#allocation6 + $0x480] sm:$0xff]  ;;  %233 = vmatprep.subr.mxu0 %v132_v6  ;;  %v137_v44 = vld [vmem:[#allocation6 + $0x1f0] sm:$0xff]  ;;  %s630_s22 = scalar_lea.vmem %s561_s1, 512  ;;  %p635_p11 = scmp.lt.s32.totalorder %s561_s1, %s561_s1 }
  0x1f   :  { %v128_v10 = vld [vmem:[#allocation6 + $0x1a8] sm:$0xff]  ;;  %v52_v12 = vsub.s32 0, %v686_v2  ;;  %v56_v13 = vsub.s32 1, %v686_v2  ;;  %v60_v14 = vsub.s32 2, %v686_v2  ;;  %324 = vmatprep.subr.mxu1 %v220_v9  ;;  %v127_v15 = vld [vmem:[#allocation6 + $0x1a0] sm:$0xff]  ;;  %234 = vmatpush1.msra.mxu0 %v131_v8  ;;  %v134_v46 = vld [vmem:[#allocation6 + $0x1d8] sm:$0xff]  ;;  %p631_p10 = scmp.ne.s32.totalorder %s561_s1, %s630_s22  ;;  %p636_p12 = scmp.lt.s32.totalorder %s630_s22, %s630_s22 }
  0x20   :  { %v216_v16 = vld [vmem:[#allocation6 + $0x468] sm:$0xff]  ;;  %325 = vmatpush1.msra.mxu1 %v219_v11  ;;  %v215_v18 = vld [vmem:[#allocation6 + $0x460] sm:$0xff]  ;;  %235 = vmatprep.subr.mxu0 %v128_v10  ;;  %v133_v48 = vld [vmem:[#allocation6 + $0x1d0] sm:$0xff] }
  0x21   :  { %v124_v17 = vld [vmem:[#allocation6 + $0x188] sm:$0xff]  ;;  %326 = vmatprep.subr.mxu1 %v216_v16  ;;  %v123_v20 = vld [vmem:[#allocation6 + $0x180] sm:$0xff]  ;;  %236 = vmatpush1.msra.mxu0 %v127_v15  ;;  %v691_v24 = vrot.slane %v47_v22, %v52_v12  ;;  %v693_v25 = vrot.slane %v47_v22, %v56_v13  ;;  %v61_v26 = vrot.slane %v47_v22, %v60_v14  ;;  %v130_v50 = vld [vmem:[#allocation6 + $0x1b8] sm:$0xff]  ;;  %p637_p13 = por %p636_p12, %p635_p11 }
  0x22   :  { %v212_v19 = vld [vmem:[#allocation6 + $0x448] sm:$0xff]  ;;  %v211_v21 = vld [vmem:[#allocation6 + $0x440] sm:$0xff]  ;;  %327 = vmatpush1.msra.mxu1 %v215_v18  ;;  %237 = vmatprep.subr.mxu0 %v124_v17  ;;  %v129_v52 = vld [vmem:[#allocation6 + $0x1b0] sm:$0xff] }
  0x23   :  { %v120_v23 = vld [vmem:[#allocation6 + $0x168] sm:$0xff]  ;;  %328 = vmatprep.subr.mxu1 %v212_v19  ;;  %v119_v28 = vld [vmem:[#allocation6 + $0x160] sm:$0xff]  ;;  %238 = vmatpush1.msra.mxu0 %v123_v20  ;;  %vm62_vm1 = vcmp.eq.s32.totalorder %v691_v24, %v686_v2  ;;  %vm63_vm2 = vcmp.eq.s32.totalorder %v693_v25, %v686_v2  ;;  %vm64_vm3 = vcmp.eq.s32.totalorder %v61_v26, %v686_v2  ;;  %v126_v54 = vld [vmem:[#allocation6 + $0x198] sm:$0xff]  ;;  %p638_p0 = pnand %p637_p13, %p631_p10 }
  0x24   :  { %v208_v27 = vld [vmem:[#allocation6 + $0x428] sm:$0xff]  ;;  %v207_v29 = vld [vmem:[#allocation6 + $0x420] sm:$0xff]  ;;  %329 = vmatpush1.msra.mxu1 %v211_v21  ;;  %239 = vmatprep.subr.mxu0 %v120_v23  ;;  %v570_v32 = vsel %vm62_vm1, 1.0, %v660_v1  ;;  %v571_v33 = vsel %vm63_vm2, 1.0, %v660_v1  ;;  %v709_v34 = vsel %vm64_vm3, 1.0, %v660_v1  ;;  %v125_v56 = vld [vmem:[#allocation6 + $0x190] sm:$0xff] }
  0x25   :  { %v116_v30 = vld [vmem:[#allocation6 + $0x148] sm:$0xff]  ;;  %330 = vmatprep.subr.mxu1 %v208_v27  ;;  %v115_v35 = vld [vmem:[#allocation6 + $0x140] sm:$0xff]  ;;  %v524_v37 = vadd.f32 %v571_v33, %v570_v32  ;;  %v525_v38 = vsel %vm227_vm0, %v709_v34, 0.0  ;;  %240 = vmatpush1.msra.mxu0 %v119_v28  ;;  %v122_v58 = vld [vmem:[#allocation6 + $0x178] sm:$0xff] }
  0x26   :  { %v204_v31 = vld [vmem:[#allocation6 + $0x408] sm:$0xff]  ;;  %v203_v36 = vld [vmem:[#allocation6 + $0x400] sm:$0xff]  ;;  %331 = vmatpush1.msra.mxu1 %v207_v29  ;;  %241 = vmatprep.subr.mxu0 %v116_v30  ;;  %v121_v60 = vld [vmem:[#allocation6 + $0x170] sm:$0xff] }
  0x27   :  { %v112_v39 = vld [vmem:[#allocation6 + $0x128] sm:$0xff]  ;;  %332 = vmatprep.subr.mxu1 %v204_v31  ;;  %v111_v41 = vld [vmem:[#allocation6 + $0x120] sm:$0xff]  ;;  %v526_v42 = vadd.f32 %v525_v38, %v524_v37  ;;  %242 = vmatpush1.msra.mxu0 %v115_v35  ;;  %v118_v62 = vld [vmem:[#allocation6 + $0x158] sm:$0xff] }
  0x28   :  { %333 = vmatpush1.msra.mxu1 %v203_v36  ;;  %v108_v43 = vld [vmem:[#allocation6 + $0x108] sm:$0xff]  ;;  %243 = vmatprep.subr.mxu0 %v112_v39  ;;  %v107_v45 = vld [vmem:[#allocation6 + $0x100] sm:$0xff]  ;;  %v117_v0 = vld [vmem:[#allocation6 + $0x150] sm:$0xff] }
  0x29   :  { %373 = vmatprep.subr.mxu1 %v138_v40  ;;  %527 = vadd.xlane.f32.xlu0 %v526_v42  ;;  %v104_v47 = vld [vmem:[#allocation6 + $0xe8] sm:$0xff]  ;;  %v103_v49 = vld [vmem:[#allocation6 + $0xe0] sm:$0xff]  ;;  %v114_v4 = vld [vmem:[#allocation6 + $0x138] sm:$0xff] }
  0x2a   :  { %244 = vmatpush1.msra.mxu0 %v111_v41  ;;  %575 = vmatmul.mubr.msk.f32.vlgmr.msra.gmra.mxu1 %vm227_vm0, %v709_v34  ;;  %v100_v51 = vld [vmem:[#allocation6 + $0xc8] sm:$0xff]  ;;  %v99_v53 = vld [vmem:[#allocation6 + $0xc0] sm:$0xff]  ;;  %v113_v6 = vld [vmem:[#allocation6 + $0x130] sm:$0xff] }
  0x2b   :  { %245 = vmatprep.subr.mxu0 %v108_v43  ;;  %374 = vmatpush1.msra.mxu1 %v137_v44  ;;  %v96_v55 = vld [vmem:[#allocation6 + $0xa8] sm:$0xff]  ;;  %v95_v57 = vld [vmem:[#allocation6 + $0xa0] sm:$0xff]  ;;  %v110_v8 = vld [vmem:[#allocation6 + $0x118] sm:$0xff] }
  0x2c   :  { %246 = vmatpush1.msra.mxu0 %v107_v45  ;;  %375 = vmatprep.subr.mxu1 %v134_v46  ;;  %v92_v59 = vld [vmem:[#allocation6 + $0x88] sm:$0xff]  ;;  %v91_v61 = vld [vmem:[#allocation6 + $0x80] sm:$0xff]  ;;  %v109_v10 = vld [vmem:[#allocation6 + $0x110] sm:$0xff] }
  0x2d   :  { %247 = vmatprep.subr.mxu0 %v104_v47  ;;  %376 = vmatpush1.msra.mxu1 %v133_v48  ;;  %v88_v63 = vld [vmem:[#allocation6 + $0x68] sm:$0xff]  ;;  %v87_v3 = vld [vmem:[#allocation6 + $0x60] sm:$0xff]  ;;  %v106_v12 = vld [vmem:[#allocation6 + $0xf8] sm:$0xff] }
  0x2e   :  { %248 = vmatpush1.msra.mxu0 %v103_v49  ;;  %377 = vmatprep.subr.mxu1 %v130_v50  ;;  %v84_v5 = vld [vmem:[#allocation6 + $0x48] sm:$0xff]  ;;  %v83_v7 = vld [vmem:[#allocation6 + $0x40] sm:$0xff]  ;;  %v105_v14 = vld [vmem:[#allocation6 + $0xf0] sm:$0xff] }
  0x2f   :  { %249 = vmatprep.subr.mxu0 %v100_v51  ;;  %378 = vmatpush1.msra.mxu1 %v129_v52  ;;  %v80_v9 = vld [vmem:[#allocation6 + $0x28] sm:$0xff]  ;;  %v79_v11 = vld [vmem:[#allocation6 + $0x20] sm:$0xff]  ;;  %v102_v16 = vld [vmem:[#allocation6 + $0xd8] sm:$0xff] }
  0x30   :  { %250 = vmatpush1.msra.mxu0 %v99_v53  ;;  %379 = vmatprep.subr.mxu1 %v126_v54  ;;  %v76_v13 = vld [vmem:[#allocation6 + $0x8] sm:$0xff]  ;;  %v75_v15 = vld [vmem:[#allocation6] sm:$0xff]  ;;  %v101_v18 = vld [vmem:[#allocation6 + $0xd0] sm:$0xff] }
  0x31   :  { %251 = vmatprep.subr.mxu0 %v96_v55  ;;  %380 = vmatpush1.msra.mxu1 %v125_v56  ;;  %v200_v17 = vld [vmem:[#allocation6 + $0x3e8] sm:$0xff]  ;;  %v199_v19 = vld [vmem:[#allocation6 + $0x3e0] sm:$0xff]  ;;  %v98_v20 = vld [vmem:[#allocation6 + $0xb8] sm:$0xff] }
  0x32   :  { %252 = vmatpush1.msra.mxu0 %v95_v57  ;;  %381 = vmatprep.subr.mxu1 %v122_v58  ;;  %v196_v21 = vld [vmem:[#allocation6 + $0x3c8] sm:$0xff]  ;;  %v97_v22 = vld [vmem:[#allocation6 + $0xb0] sm:$0xff]  ;;  %v195_v23 = vld [vmem:[#allocation6 + $0x3c0] sm:$0xff] }
  0x33   :  { %253 = vmatprep.subr.mxu0 %v92_v59  ;;  %382 = vmatpush1.msra.mxu1 %v121_v60  ;;  %v94_v26 = vld [vmem:[#allocation6 + $0x98] sm:$0xff]  ;;  %v192_v27 = vld [vmem:[#allocation6 + $0x3a8] sm:$0xff]  ;;  %v93_v28 = vld [vmem:[#allocation6 + $0x90] sm:$0xff] }
  0x34   :  { %254 = vmatpush1.msra.mxu0 %v91_v61  ;;  %383 = vmatprep.subr.mxu1 %v118_v62  ;;  %v191_v29 = vld [vmem:[#allocation6 + $0x3a0] sm:$0xff]  ;;  %v90_v30 = vld [vmem:[#allocation6 + $0x78] sm:$0xff]  ;;  %v188_v31 = vld [vmem:[#allocation6 + $0x388] sm:$0xff] }
  0x35   :  { %255 = vmatprep.subr.mxu0 %v88_v63  ;;  %384 = vmatpush1.msra.mxu1 %v117_v0  ;;  %v89_v32 = vld [vmem:[#allocation6 + $0x70] sm:$0xff]  ;;  %v187_v33 = vld [vmem:[#allocation6 + $0x380] sm:$0xff]  ;;  %v86_v35 = vld [vmem:[#allocation6 + $0x58] sm:$0xff] }
  0x36   :  { %256 = vmatpush1.msra.mxu0 %v87_v3  ;;  %385 = vmatprep.subr.mxu1 %v114_v4  ;;  %v184_v36 = vld [vmem:[#allocation6 + $0x368] sm:$0xff]  ;;  %v85_v37 = vld [vmem:[#allocation6 + $0x50] sm:$0xff]  ;;  %v183_v38 = vld [vmem:[#allocation6 + $0x360] sm:$0xff] }
  0x37   :  { %257 = vmatprep.subr.mxu0 %v84_v5  ;;  %386 = vmatpush1.msra.mxu1 %v113_v6  ;;  %v82_v39 = vld [vmem:[#allocation6 + $0x38] sm:$0xff]  ;;  %v180_v40 = vld [vmem:[#allocation6 + $0x348] sm:$0xff]  ;;  %v81_v41 = vld [vmem:[#allocation6 + $0x30] sm:$0xff] }
  0x38   :  { %258 = vmatpush1.msra.mxu0 %v83_v7  ;;  %387 = vmatprep.subr.mxu1 %v110_v8  ;;  %v179_v42 = vld [vmem:[#allocation6 + $0x340] sm:$0xff]  ;;  %v78_v43 = vld [vmem:[#allocation6 + $0x18] sm:$0xff]  ;;  %v176_v44 = vld [vmem:[#allocation6 + $0x328] sm:$0xff] }
  0x39   :  { %259 = vmatprep.subr.mxu0 %v80_v9  ;;  %388 = vmatpush1.msra.mxu1 %v109_v10  ;;  %v77_v45 = vld [vmem:[#allocation6 + $0x10] sm:$0xff]  ;;  %v175_v46 = vld [vmem:[#allocation6 + $0x320] sm:$0xff]  ;;  %v202_v47 = vld [vmem:[#allocation6 + $0x3f8] sm:$0xff] }
  0x3a   :  { %260 = vmatpush1.msra.mxu0 %v79_v11  ;;  %389 = vmatprep.subr.mxu1 %v106_v12  ;;  %v172_v48 = vld [vmem:[#allocation6 + $0x308] sm:$0xff]  ;;  %v201_v49 = vld [vmem:[#allocation6 + $0x3f0] sm:$0xff]  ;;  %v171_v50 = vld [vmem:[#allocation6 + $0x300] sm:$0xff] }
  0x3b   :  { %261 = vmatprep.subr.mxu0 %v76_v13  ;;  %390 = vmatpush1.msra.mxu1 %v105_v14  ;;  %v198_v51 = vld [vmem:[#allocation6 + $0x3d8] sm:$0xff]  ;;  %v168_v52 = vld [vmem:[#allocation6 + $0x2e8] sm:$0xff]  ;;  %v197_v53 = vld [vmem:[#allocation6 + $0x3d0] sm:$0xff] }
  0x3c   :  { %262 = vmatpush1.msra.mxu0 %v75_v15  ;;  %391 = vmatprep.subr.mxu1 %v102_v16  ;;  %v167_v54 = vld [vmem:[#allocation6 + $0x2e0] sm:$0xff]  ;;  %v194_v55 = vld [vmem:[#allocation6 + $0x3b8] sm:$0xff]  ;;  %v164_v56 = vld [vmem:[#allocation6 + $0x2c8] sm:$0xff] }
  0x3d   :  { %263 = vmatprep.subr.mxu0 %v200_v17  ;;  %392 = vmatpush1.msra.mxu1 %v101_v18  ;;  %v193_v57 = vld [vmem:[#allocation6 + $0x3b0] sm:$0xff]  ;;  %v163_v58 = vld [vmem:[#allocation6 + $0x2c0] sm:$0xff]  ;;  %v190_v59 = vld [vmem:[#allocation6 + $0x398] sm:$0xff] }
  0x3e   :  { %264 = vmatpush2.msra.mxu0 %v199_v19  ;;  %393 = vmatprep.subr.mxu1 %v98_v20  ;;  %v160_v60 = vld [vmem:[#allocation6 + $0x2a8] sm:$0xff]  ;;  %v189_v61 = vld [vmem:[#allocation6 + $0x390] sm:$0xff]  ;;  %v159_v62 = vld [vmem:[#allocation6 + $0x2a0] sm:$0xff] }
  0x3f   :  { %265 = vmatprep.subr.mxu0 %v196_v21  ;;  %394 = vmatpush1.msra.mxu1 %v97_v22  ;;  %v186_v63 = vld [vmem:[#allocation6 + $0x378] sm:$0xff]  ;;  %v156_v0 = vld [vmem:[#allocation6 + $0x288] sm:$0xff]  ;;  %v185_v3 = vld [vmem:[#allocation6 + $0x370] sm:$0xff] }
  0x40   :  { %266 = vmatpush2.msra.mxu0 %v195_v23  ;;  %395 = vmatprep.subr.mxu1 %v94_v26  ;;  %v155_v4 = vld [vmem:[#allocation6 + $0x280] sm:$0xff]  ;;  %v182_v5 = vld [vmem:[#allocation6 + $0x358] sm:$0xff]  ;;  %v152_v6 = vld [vmem:[#allocation6 + $0x268] sm:$0xff] }
  0x41   :  { %267 = vmatprep.subr.mxu0 %v192_v27  ;;  %396 = vmatpush1.msra.mxu1 %v93_v28  ;;  %v181_v7 = vld [vmem:[#allocation6 + $0x350] sm:$0xff]  ;;  %v151_v8 = vld [vmem:[#allocation6 + $0x260] sm:$0xff]  ;;  %v178_v9 = vld [vmem:[#allocation6 + $0x338] sm:$0xff]  ;;  %v661_v27 = vmov 1.0  }
  0x42   :  { %268 = vmatpush2.msra.mxu0 %v191_v29  ;;  %397 = vmatprep.subr.mxu1 %v90_v30  ;;  %v148_v10 = vld [vmem:[#allocation6 + $0x248] sm:$0xff]  ;;  %v177_v11 = vld [vmem:[#allocation6 + $0x330] sm:$0xff]  ;;  %v147_v12 = vld [vmem:[#allocation6 + $0x240] sm:$0xff] }
  0x43   :  { %269 = vmatprep.subr.mxu0 %v188_v31  ;;  %398 = vmatpush1.msra.mxu1 %v89_v32  ;;  %v174_v13 = vld [vmem:[#allocation6 + $0x318] sm:$0xff]  ;;  %v144_v14 = vld [vmem:[#allocation6 + $0x228] sm:$0xff]  ;;  %v173_v15 = vld [vmem:[#allocation6 + $0x310] sm:$0xff] }
  0x44   :  { %270 = vmatpush2.msra.mxu0 %v187_v33  ;;  %399 = vmatprep.subr.mxu1 %v86_v35  ;;  %v143_v16 = vld [vmem:[#allocation6 + $0x220] sm:$0xff]  ;;  %v170_v17 = vld [vmem:[#allocation6 + $0x2f8] sm:$0xff]  ;;  %v140_v18 = vld [vmem:[#allocation6 + $0x208] sm:$0xff] }
  0x45   :  { %271 = vmatprep.subr.mxu0 %v184_v36  ;;  %400 = vmatpush1.msra.mxu1 %v85_v37  ;;  %v169_v19 = vld [vmem:[#allocation6 + $0x2f0] sm:$0xff]  ;;  %v139_v20 = vld [vmem:[#allocation6 + $0x200] sm:$0xff]  ;;  %v166_v21 = vld [vmem:[#allocation6 + $0x2d8] sm:$0xff] }
  0x46   :  { %272 = vmatpush2.msra.mxu0 %v183_v38  ;;  %401 = vmatprep.subr.mxu1 %v82_v39  ;;  %v165_v22 = vld [vmem:[#allocation6 + $0x2d0] sm:$0xff]  ;;  %v162_v23 = vld [vmem:[#allocation6 + $0x2b8] sm:$0xff] }
  0x47   :  { %273 = vmatprep.subr.mxu0 %v180_v40  ;;  %402 = vmatpush1.msra.mxu1 %v81_v41  ;;  %v226_v26 = vld [vmem:[#allocation6 + $0x4b8] sm:$0xff]  ;;  %v161_v28 = vld [vmem:[#allocation6 + $0x2b0] sm:$0xff] }
  0x48   :  { %274 = vmatpush2.msra.mxu0 %v179_v42  ;;  %403 = vmatprep.subr.mxu1 %v78_v43  ;;  %v225_v29 = vld [vmem:[#allocation6 + $0x4b0] sm:$0xff]  ;;  %v158_v30 = vld [vmem:[#allocation6 + $0x298] sm:$0xff] }
  0x49   :  { %275 = vmatprep.subr.mxu0 %v176_v44  ;;  %404 = vmatpush1.msra.mxu1 %v77_v45  ;;  %v222_v31 = vld [vmem:[#allocation6 + $0x498] sm:$0xff]  ;;  %v157_v32 = vld [vmem:[#allocation6 + $0x290] sm:$0xff] }
  0x4a   :  { %276 = vmatpush2.msra.mxu0 %v175_v46  ;;  %405 = vmatprep.subr.mxu1 %v202_v47  ;;  %v221_v33 = vld [vmem:[#allocation6 + $0x490] sm:$0xff]  ;;  %v154_v35 = vld [vmem:[#allocation6 + $0x278] sm:$0xff] }
  0x4b   :  { %277 = vmatprep.subr.mxu0 %v172_v48  ;;  %406 = vmatpush2.msra.mxu1 %v201_v49  ;;  %v218_v36 = vld [vmem:[#allocation6 + $0x478] sm:$0xff]  ;;  %v153_v37 = vld [vmem:[#allocation6 + $0x270] sm:$0xff] }
  0x4c   :  { %278 = vmatpush2.msra.mxu0 %v171_v50  ;;  %407 = vmatprep.subr.mxu1 %v198_v51  ;;  %v217_v38 = vld [vmem:[#allocation6 + $0x470] sm:$0xff]  ;;  %v150_v39 = vld [vmem:[#allocation6 + $0x258] sm:$0xff]  ;;  %v662_v51 = vmov 0  }
  0x4d   :  { %279 = vmatprep.subr.mxu0 %v168_v52  ;;  %408 = vmatpush2.msra.mxu1 %v197_v53  ;;  %v214_v40 = vld [vmem:[#allocation6 + $0x458] sm:$0xff]  ;;  %v149_v41 = vld [vmem:[#allocation6 + $0x250] sm:$0xff] }
  0x4e   :  { %280 = vmatpush2.msra.mxu0 %v167_v54  ;;  %409 = vmatprep.subr.mxu1 %v194_v55  ;;  %v213_v42 = vld [vmem:[#allocation6 + $0x450] sm:$0xff]  ;;  %v146_v43 = vld [vmem:[#allocation6 + $0x238] sm:$0xff] }
  0x4f   :  { %281 = vmatprep.subr.mxu0 %v164_v56  ;;  %410 = vmatpush2.msra.mxu1 %v193_v57  ;;  %v210_v44 = vld [vmem:[#allocation6 + $0x438] sm:$0xff]  ;;  %v145_v45 = vld [vmem:[#allocation6 + $0x230] sm:$0xff] }
  0x50   :  { %282 = vmatpush2.msra.mxu0 %v163_v58  ;;  %411 = vmatprep.subr.mxu1 %v190_v59  ;;  %v209_v46 = vld [vmem:[#allocation6 + $0x430] sm:$0xff]  ;;  %v142_v47 = vld [vmem:[#allocation6 + $0x218] sm:$0xff] }
  0x51   :  { %283 = vmatprep.subr.mxu0 %v160_v60  ;;  %412 = vmatpush2.msra.mxu1 %v189_v61  ;;  %v206_v48 = vld [vmem:[#allocation6 + $0x418] sm:$0xff]  ;;  %v141_v49 = vld [vmem:[#allocation6 + $0x210] sm:$0xff] }
  0x52   :  { %284 = vmatpush2.msra.mxu0 %v159_v62  ;;  %413 = vmatprep.subr.mxu1 %v186_v63  ;;  %v205_v50 = vld [vmem:[#allocation6 + $0x410] sm:$0xff] }
  0x53   :  { %285 = vmatprep.subr.mxu0 %v156_v0  ;;  %414 = vmatpush2.msra.mxu1 %v185_v3 }
  0x54   :  { %286 = vmatpush2.msra.mxu0 %v155_v4  ;;  %415 = vmatprep.subr.mxu1 %v182_v5 }
  0x55   :  { %287 = vmatprep.subr.mxu0 %v152_v6  ;;  %416 = vmatpush2.msra.mxu1 %v181_v7 }
  0x56   :  { %288 = vmatpush2.msra.mxu0 %v151_v8  ;;  %417 = vmatprep.subr.mxu1 %v178_v9 }
  0x57   :  { %289 = vmatprep.subr.mxu0 %v148_v10  ;;  %418 = vmatpush2.msra.mxu1 %v177_v11 }
  0x58   :  { %290 = vmatpush2.msra.mxu0 %v147_v12  ;;  %419 = vmatprep.subr.mxu1 %v174_v13 }
  0x59   :  { %291 = vmatprep.subr.mxu0 %v144_v14  ;;  %420 = vmatpush2.msra.mxu1 %v173_v15 }
  0x5a   :  { %292 = vmatpush2.msra.mxu0 %v143_v16  ;;  %421 = vmatprep.subr.mxu1 %v170_v17 }
  0x5b   :  { %293 = vmatprep.subr.mxu0 %v140_v18  ;;  %422 = vmatpush2.msra.mxu1 %v169_v19 }
  0x5c   :  { %294 = vmatpush2.msra.mxu0 %v139_v20  ;;  %573 = vmatprep.mubr.msk.f32.mxu0 %vm63_vm2, %v661_v27 }
  0x5d   :  { %423 = vmatprep.subr.mxu1 %v166_v21  ;;  %574 = vmatmul.mubr.msk.f32.vlgmr.msra.gmra.mxu0 %vm62_vm1, %v661_v27 }
  0x5e   :  { %424 = vmatpush2.msra.mxu1 %v165_v22  ;;  %464 = vmatprep.subr.mxu0 %v226_v26 }
  0x5f   :  { %425 = vmatprep.subr.mxu1 %v162_v23  ;;  %465 = vmatpush1.msra.mxu0 %v225_v29 }
  0x60   :  { %426 = vmatpush2.msra.mxu1 %v161_v28  ;;  %466 = vmatprep.subr.mxu0 %v222_v31 }
  0x61   :  { %427 = vmatprep.subr.mxu1 %v158_v30  ;;  %467 = vmatpush1.msra.mxu0 %v221_v33 }
  0x62   :  { %428 = vmatpush2.msra.mxu1 %v157_v32  ;;  %468 = vmatprep.subr.mxu0 %v218_v36 }
  0x63   :  { %429 = vmatprep.subr.mxu1 %v154_v35  ;;  %469 = vmatpush1.msra.mxu0 %v217_v38 }
  0x64   :  { %430 = vmatpush2.msra.mxu1 %v153_v37  ;;  %470 = vmatprep.subr.mxu0 %v214_v40 }
  0x65   :  { %431 = vmatprep.subr.mxu1 %v150_v39  ;;  %471 = vmatpush1.msra.mxu0 %v213_v42 }
  0x66   :  { %432 = vmatpush2.msra.mxu1 %v149_v41  ;;  %472 = vmatprep.subr.mxu0 %v210_v44 }
  0x67   :  { %433 = vmatprep.subr.mxu1 %v146_v43  ;;  %473 = vmatpush1.msra.mxu0 %v209_v46 }
  0x68   :  { %434 = vmatpush2.msra.mxu1 %v145_v45  ;;  %474 = vmatprep.subr.mxu0 %v206_v48 }
  0x69   :  { %435 = vmatprep.subr.mxu1 %v142_v47  ;;  %576 = vmatprep.mubr.msk.f32.mxu1 %vm63_vm2, %v661_v27 }
  0x6a   :  { %436 = vmatpush2.msra.mxu1 %v141_v49  ;;  %475 = vmatpush1.msra.mxu0 %v205_v50 }
  0x6b   :  { %508 = vmatprep.mubr.f32.mxu0 %v660_v1  ;;  %577 = vmatmul.mubr.msk.f32.vlgmr.msra.gmra.mxu1 %vm62_vm1, %v661_v27 }
  0x6c   :  { %578 = vmatmul.mubr.msk.f32.vlgmr.msra.gmra.mxu0 %vm227_vm0, %v709_v34  ;;  %587 = vset.pattern.permute.xlu0 %v662_v51 }
  0xb2   :  { %v528_v52 = vpop.xlane.xlu0 %527 }
  0xb3   :  { %v535_v53 = vmax.f32 %v528_v52, 1.0 }
  0xb5   :  { %542 = vperm.xlu0 %587, %v535_v53  }
  0xea   :  { %v368_v54 = vpop.f32.mrf.mxu1 }
  0xec   :  { %v370_v56 = vpop.f32.mrf.mxu1 }
 0x11d   :  { %v297_v55 = vpop.f32.mrf.mxu0 }
 0x11e   :  { %v369_v2 = vadd.f32 %v368_v54, %v297_v55 }
 0x11f   :  { %v299_v25 = vpop.f32.mrf.mxu0 }
 0x120   :  { %v371_v24 = vadd.f32 %v370_v56, %v299_v25 }
 0x12b   :  { %v439_v58 = vpop.f32.mrf.mxu1 }
 0x12c   :  { %v510_v1 = vpop.f32.mrf.mxu0 }
 0x12d   :  { %v441_v59 = vpop.f32.mrf.mxu1  ;;  %v511_v61 = vadd.f32 %v510_v1, %v439_v58 }
 0x12e   :  { %v512_v60 = vpop.f32.mrf.mxu0 }
 0x12f   :  { %v513_v62 = vadd.f32 %v512_v60, %v441_v59 }
 0x130   :  { %v543_v57 = vpop.permute.xlu0 %542 }
 0x131   :  { %588 = vrcp.f32 %v543_v57 }
 0x13e   :  { %v589_v34 = vpop.eup %588 }
 0x13f   :  { %v546_v63 = vmul.f32 %v589_v34, %v369_v2  ;;  %v547_v0 = vmul.f32 %v589_v34, %v371_v24  ;;  %v548_v3 = vmul.f32 %v589_v34, %v511_v61  ;;  %v549_v4 = vmul.f32 %v589_v34, %v513_v62 }
 0x141   :  { %550 = vst [vmem:[#allocation8] sm:$0xff] %v546_v63  ;;  %551 = vst [vmem:[#allocation8 + $0x8] sm:$0xff] %v547_v0 }
 0x142   :  { %552 = vst [vmem:[#allocation8 + $0x10] sm:$0xff] %v548_v3  ;;  %553 = vst [vmem:[#allocation8 + $0x18] sm:$0xff] %v549_v4 }
 0x143   :  { %641 = shalt.err (!%p638_p0)
}
 0x144   :  { %563 = dma.vmem_to_hbm [thread:$0]  %s561_s1, 512, %s735_s2, [#allocation5]  }
 0x145   :  { %654 = dma.done.wait [#allocation5], 512  }
 0x146   :  { %655 = vsyncadd [#allocation5], 4294966784 }
 0x147   :  { %567 = vsyncpa [#allocation4], 1 }
 0x148   :  { %568 = vsyncpa [#allocation7], 1 }
 0x149   :  { %569 = vsyncpa [#allocation5], 1 }

</bundles_post_ra>
